<compile_context>
chip_gen: v7x
topology: tpu7x:2x2x1
jax: 0.10.0
libtpu: 0.0.40
codegen_flags: <defaults>
</compile_context>

<pallas_src>
import functools

import jax
import jax.numpy as jnp
from jax.experimental import pallas as pl
from jax.experimental.pallas import tpu as pltpu

SCALER = 10.0
EPS = 1e-12  # F.normalize default eps


def _round_up(v, m):
    return ((v + m - 1) // m) * m


def _cosine_kernel(x_ref, w_ref, o_ref):
    # x_ref: [C, TS]  tile of pixels (channels on sublanes, spatial on lanes)
    # w_ref: [K, C]   pre-L2-normalized classifier weights (constant block)
    # o_ref: [K, TS]  lane-dense output tile
    x = x_ref[...]
    xf = x.astype(jnp.float32)

    # per-pixel squared L2 norm over channels; accumulate in f32
    ss = jnp.sum(xf * xf, axis=0, keepdims=True)                  # [1, TS]
    # F.normalize clamp: x / max(||x||, eps); fold the *10 scaler in for free.
    # (approx=False: the [1, TS] reciprocal is negligible, keep full accuracy.)
    inv = SCALER * pl.reciprocal(jnp.maximum(jnp.sqrt(ss), EPS), approx=False)

    # MXU: [K, C] @ [C, TS] -> [K, TS], f32 accumulation.
    logits = jnp.dot(w_ref[...], x, preferred_element_type=jnp.float32)

    # Rescale the small [K, TS] tile (cheaper than scaling the [C, TS] input).
    o_ref[...] = (logits * inv).astype(o_ref.dtype)


@functools.partial(jax.jit, static_argnames=("ts",))
def _cosine_pallas(x3, wn, *, ts):
    """x3: [B, C, HWp] (HWp multiple of ts), wn: [K, C] pre-normalized.

    Returns [B, K, HWp] float32 logits (already scaled by 10)."""
    B, C, HWp = x3.shape
    K = wn.shape[0]
    grid = (B, HWp // ts)

    # Per-step VMEM: double-buffered x tile + output tile + (constant) weight.
    # TODO(synk): single-buffer the constant weight block (pl.Buffered(1)) when
    # C*K is large; left double-buffered here for maximum lowering portability.
    est = (2 * C * ts * x3.dtype.itemsize
           + 2 * K * ts * 4
           + 2 * K * C * wn.dtype.itemsize)
    vmem_limit = int(min(max(4 * est, 16 * 1024 * 1024), 48 * 1024 * 1024))

    return pl.pallas_call(
        _cosine_kernel,
        out_shape=jax.ShapeDtypeStruct((B, K, HWp), jnp.float32),
        grid_spec=pltpu.PrefetchScalarGridSpec(
            num_scalar_prefetch=0,
            grid=grid,
            in_specs=[
                # batch dim squeezed out of the kernel ref
                pl.BlockSpec((None, C, ts), lambda b, s: (b, 0, s)),
                # full weight, constant block (never re-indexed across the grid)
                pl.BlockSpec((K, C), lambda b, s: (0, 0)),
            ],
            out_specs=pl.BlockSpec((None, K, ts), lambda b, s: (b, 0, s)),
        ),
        compiler_params=pltpu.CompilerParams(
            # both axes independent -> megacore sharding on v7x (2 TCs)
            dimension_semantics=("parallel", "parallel"),
            vmem_limit_bytes=vmem_limit,
        ),
    )(x3, wn)


def cosine_classifier_forward(x, weight, x_deepsup=None, weight_deepsup=None,
                              *, compute_dtype=jnp.float32, spatial_tile=512):
    """JAX equivalent of CosineClassifier.forward.

    x:      [B, C, H, W]  (NCHW, like PyTorch)
    weight: [K, C, 1, 1]  (Conv2d 1x1, bias=False)
    compute_dtype: jnp.float32 or jnp.bfloat16 (bf16 halves HBM read traffic
                   on v6e/v7x; norms/matmul still accumulate in f32).
    Returns (logits [B, K, H, W] float32, logits_deepsup or None).
    """
    def run(inp, w4d):
        B, C, H, W = inp.shape
        K = w4d.shape[0]
        HW = H * W

        # Hoisted weight normalization (done once, in f32, fused by XLA).
        w2 = w4d.reshape(K, C).astype(jnp.float32)
        w_norm = jnp.sqrt(jnp.sum(w2 * w2, axis=1, keepdims=True))
        wn = (w2 / jnp.maximum(w_norm, EPS)).astype(compute_dtype)

        # NCHW-native flatten (free reshape); pad spatial axis to the lane tile.
        tile = min(int(spatial_tile), _round_up(HW, 128))
        tile = _round_up(tile, 128)
        HWp = _round_up(HW, tile)
        x3 = inp.reshape(B, C, HW).astype(compute_dtype)
        if HWp != HW:
            x3 = jnp.pad(x3, ((0, 0), (0, 0), (0, HWp - HW)))

        out3 = _cosine_pallas(x3, wn, ts=tile)          # [B, K, HWp] f32
        return out3[..., :HW].reshape(B, K, H, W)

    logits = run(x, weight)
    if x_deepsup is not None and weight_deepsup is not None:
        logits_deepsup = run(x_deepsup, weight_deepsup)
    else:
        logits_deepsup = None
    return logits, logits_deepsup


def _reference(x, weight):
    # pure-JAX f32 reference for correctness check
    xn = x / jnp.maximum(
        jnp.sqrt(jnp.sum(x * x, axis=1, keepdims=True)), EPS)
    w = weight[:, :, 0, 0]
    wn = w / jnp.maximum(
        jnp.sqrt(jnp.sum(w * w, axis=1, keepdims=True)), EPS)
    return SCALER * jnp.einsum("bchw,kc->bkhw", xn, wn)


if __name__ == "__main__":
    key = jax.random.PRNGKey(0)
    k1, k2, k3, k4 = jax.random.split(key, 4)

    B, C, H, W = 2, 4, 16, 16
    K = 8  # classes
    deepsup = True

    x = jax.random.normal(k1, (B, C, H, W), dtype=jnp.float32)
    x_deepsup = jax.random.normal(k2, (B, C, H, W), dtype=jnp.float32)
    # Deterministic stand-in for Conv2d kaiming-uniform init (synthetic weights).
    weight = jax.random.normal(k3, (K, C, 1, 1), dtype=jnp.float32) * 0.1
    weight_deepsup = jax.random.normal(k4, (K, C, 1, 1), dtype=jnp.float32) * 0.1

    # --- f32 path: tight correctness check -------------------------------
    logits, logits_deepsup = cosine_classifier_forward(
        x, weight,
        x_deepsup if deepsup else None,
        weight_deepsup if deepsup else None,
        compute_dtype=jnp.float32)
    jax.block_until_ready(logits)
    if logits_deepsup is not None:
        jax.block_until_ready(logits_deepsup)

    ref = _reference(x, weight)
    assert logits.shape == (B, K, H, W)
    assert jnp.max(jnp.abs(logits - ref)) < 1e-4
    if deepsup:
        ref_d = _reference(x_deepsup, weight_deepsup)
        assert logits_deepsup.shape == (B, K, H, W)
        assert jnp.max(jnp.abs(logits_deepsup - ref_d)) < 1e-4

    # --- bf16 fast path (v6e/v7x): looser tolerance sanity check ---------
    logits_bf16, _ = cosine_classifier_forward(
        x, weight, compute_dtype=jnp.bfloat16)
    jax.block_until_ready(logits_bf16)
    assert logits_bf16.shape == (B, K, H, W)
    assert jnp.max(jnp.abs(logits_bf16 - ref)) < 1.5e-1

    print("KERNEL_OK")
</pallas_src>

<mosaic_0001>
module attributes {stable_mosaic.version = 11 : i64} {
  func.func @_cosine_kernel(%arg0: i32, %arg1: i32, %arg2: memref<1x4x256xf32, #tpu.memory_space<vmem>>, %arg3: memref<8x4xf32, #tpu.memory_space<vmem>>, %arg4: memref<1x8x256xf32, #tpu.memory_space<vmem>>) attributes {dimension_semantics = [#tpu.dimension_semantics<parallel>, #tpu.dimension_semantics<parallel>], iteration_bounds = array<i64: 2, 1>, scalar_prefetch = 0 : i64, scratch_operands = 0 : i64, tpu.core_type = #tpu.core_type<tc>, window_params = [{transform_indices = @transform_0, window_bounds = array<i64: 1, 4, 256>}, {pipeline_mode = #tpu.pipeline_mode<synchronous>, transform_indices = @transform_1, window_bounds = array<i64: 8, 4>}, {transform_indices = @transform_2, window_bounds = array<i64: 1, 8, 256>}]} {
    %c0 = arith.constant 0 : index
    %c0_0 = arith.constant 0 : index
    %c0_1 = arith.constant 0 : index
    %0 = vector.load %arg2[%c0, %c0_0, %c0_1] : memref<1x4x256xf32, #tpu.memory_space<vmem>>, vector<1x4x256xf32>
    %1 = vector.shape_cast %0 : vector<1x4x256xf32> to vector<4x256xf32>
    %2 = arith.mulf %1, %1 : vector<4x256xf32>
    %cst = arith.constant dense<0.000000e+00> : vector<256xf32>
    %3 = vector.multi_reduction <add>, %2, %cst [0] : vector<4x256xf32> to vector<256xf32>
    %4 = vector.shape_cast %3 : vector<256xf32> to vector<1x256xf32>
    %5 = math.sqrt %4 : vector<1x256xf32>
    %cst_2 = arith.constant 9.99999996E-13 : f32
    %6 = vector.broadcast %cst_2 : f32 to vector<1x256xf32>
    %7 = arith.maximumf %5, %6 : vector<1x256xf32>
    %8 = tpu.reciprocal %7 : vector<1x256xf32> -> vector<1x256xf32>
    %cst_3 = arith.constant 1.000000e+01 : f32
    %9 = vector.broadcast %cst_3 : f32 to vector<1x256xf32>
    %10 = arith.mulf %9, %8 : vector<1x256xf32>
    %c0_4 = arith.constant 0 : index
    %c0_5 = arith.constant 0 : index
    %11 = vector.load %arg3[%c0_4, %c0_5] : memref<8x4xf32, #tpu.memory_space<vmem>>, vector<8x4xf32>
    %cst_6 = arith.constant dense<0.000000e+00> : vector<8x256xf32>
    %12 = tpu.matmul %11, %1, %cst_6 {dimension_numbers = #tpu.dot_dimension_numbers<[1], [0], [0], [1], [0, 0, 1, 1], [], []>} : vector<8x4xf32>, vector<4x256xf32>, vector<8x256xf32> -> vector<8x256xf32>
    %13 = vector.broadcast %10 : vector<1x256xf32> to vector<8x256xf32>
    %14 = arith.mulf %12, %13 : vector<8x256xf32>
    %c0_7 = arith.constant 0 : index
    %c0_8 = arith.constant 0 : index
    %c0_9 = arith.constant 0 : index
    %15 = vector.load %arg4[%c0_7, %c0_8, %c0_9] : memref<1x8x256xf32, #tpu.memory_space<vmem>>, vector<1x8x256xf32>
    %16 = vector.shape_cast %15 : vector<1x8x256xf32> to vector<8x256xf32>
    %17 = vector.shape_cast %14 : vector<8x256xf32> to vector<1x8x256xf32>
    tpu.vector_store %arg4[%c0_7, %c0_8, %c0_9], %17 {strides = array<i32>} : memref<1x8x256xf32, #tpu.memory_space<vmem>>, vector<1x8x256xf32>,
    return
  }
  func.func @transform_0(%arg0: i32, %arg1: i32) -> (i32, i32, i32) {
    %c0_i32 = arith.constant 0 : i32
    %c0_i32_0 = arith.constant 0 : i32
    return %arg0, %c0_i32, %arg1 : i32, i32, i32
  }
  func.func @transform_1(%arg0: i32, %arg1: i32) -> (i32, i32) {
    %c0_i32 = arith.constant 0 : i32
    %c0_i32_0 = arith.constant 0 : i32
    %c0_i32_1 = arith.constant 0 : i32
    return %c0_i32, %c0_i32_0 : i32, i32
  }
  func.func @transform_2(%arg0: i32, %arg1: i32) -> (i32, i32, i32) {
    %c0_i32 = arith.constant 0 : i32
    %c0_i32_0 = arith.constant 0 : i32
    return %arg0, %c0_i32, %arg1 : i32, i32, i32
  }
}

</mosaic_0001>

<bundles_post_ra>
// kernel: _cosine_pallas.1
= control target key start
LH: loop header
LB: loop body
LE: loop exit
PB: predicated region body
PF: predicated region fallthrough
CT: control target
= control target key end

     0   :  { %7 = vsyncpa [#allocation3], 0  ;;  %s807_s0 = inlined_call_operand.hbm [shape: f32[2,4,256], index: 0, kind: input, shape index: {}]   ;;  %s808_s1 = inlined_call_operand.vmem [shape: f32[8,4], index: 1, kind: input, shape index: {}]   ;;  %s809_s2 = inlined_call_operand.hbm [shape: f32[2,8,256], index: 2, kind: output, shape index: {}]  }
   0x1   :  { %9 = vsyncpa [#allocation3 + $0x1], 0 }
   0x2   :  { %10 = vsyncpa [#allocation4], 0 }
   0x3   :  { %12 = vsyncpa [#allocation4 + $0x1], 0  ;;  %s631_s9 = smov 0   ;;  %s633_s10 = smov 0  }
   0x4   :  { %s635_s11 = smov 0   ;;  %s637_s12 = smov 0  }
   0x5   :  { %s639_s13 = smov 0   ;;  %s641_s14 = smov 0  }
   0x6 LB: > { %s407_s15 = sadd.s32 4294967295, %s611_s14   ;;  %s408_s16 = sadd.s32 4294967294, %s611_s14   ;;  %s611_s14 = sphi %s641_s14, %s18_s14   ;;  %s607_s13 = sphi %s639_s13, %s825_s13   ;;  %s603_s12 = sphi %s637_s12, %s824_s12   ;;  %s599_s11 = sphi %s635_s11, %s823_s11   ;;  %s595_s10 = sphi %s633_s10, %s822_s10   ;;  %s591_s9 = sphi %s631_s9, %s821_s9  }
   0x7   : > { %s30_s17 = sadd.s32 1, %s607_s13  ;;  %s39_s18 = sadd.s32 1, %s599_s11 }
   0x8   : > { %p32_p0 = scmp.ge.s32.totalorder %s30_s17, 2  ;;  %p46_p1 = scmp.ne.s32.totalorder %s599_s11, %s595_s10 }
   0x9   : > { %p47_p2 = scmp.eq.s32.totalorder %s611_s14, 0  ;;  %p52_p3 = scmp.ne.s32.totalorder %s595_s10, %s591_s9 }
   0xa   : > { %s827_s17 = smov (%p32_p0, %s30_s17), 0  ;;  %p53_p5 = scmp.eq.s32.totalorder %s407_s15, 0 }
   0xb   : > { %p672_p4 = por %p47_p2, %p46_p1  ;;  %s34_s20 = ssub.s32 %s607_s13, %s827_s17 }
   0xc   : > { %p99_p6 = scmp.eq.s32.totalorder %s407_s15, 1  ;;  %p37_p7 = scmp.eq.s32.totalorder %s34_s20, 0 }
   0xd   : > { %p678_p8 = por %p53_p5, %p52_p3  ;;  %p105_p10 = scmp.eq.s32.totalorder %s408_s16, 1 }
   0xe   : > { %p682_p9 = por %p99_p6, %p46_p1  ;;  %p439_p13 = scmp.lt.s32.totalorder %s611_s14, 2 }
   0xf   : > { %s687_s23 = scalar_select %p37_p7, %s599_s11, %s39_s18  }
  0x10   : > { %s813_s22 = scalar_select %p682_p9, 1, 0 }
  0x11   : > { %p689_p11 = por %p105_p10, %p52_p3  ;;  %s128_s25 = sand.u32 1, %s599_s11  }
  0x12   : > { %s411_s26 = sshll.u32 %s128_s25, 3  ;;  %s425_s27 = sshll.u32 %s607_s13, 7 }
  0x13   : > { %s814_s24 = scalar_select %p689_p11, 1, 0 }
  0x14   : > { %s700_s30 = scalar_lea.hbm %s807_s0, %s425_s27  ;;  %s132_s3 = scalar_lea.vmem [#allocation2], %s411_s26 }
  0x15   : > { %s142_s4 = sshll.u32 %s132_s3, 4  ;;  %p706_p0 = pnand %p439_p13, %p672_p4  ;;  %s702_s4 = int_to_ptr.vmem [resolvable:$true] %s142_s4 }
  0x16   : > { %s129_s6 = scalar_lea.sflag [#allocation3], %s128_s25  ;;  %s499_s7 = scalar_lea.hbm %s700_s30, 128 }
  0x17   : > { %p500_p3 = scmp.ne.s32.totalorder %s700_s30, %s499_s7  ;;  %p501_p5 = pneg %p706_p0 }
  0x18   : > { %s504_s16 = scalar_lea.hbm %s807_s0, 256  ;;  %p505_p4 = scmp.lt.u32.totalorder %s700_s30, %s807_s0 }
  0x19   : > { %p502_p6 = pnand %p501_p5, %p500_p3  ;;  %p506_p10 = scmp.lt.u32.totalorder %s504_s16, %s499_s7 }
  0x1a   : > { %p508_p12 = scmp.lt.u32.totalorder %s499_s7, %s700_s30 }
  0x1b   : > { %p503_p7 = pneg %p502_p6  ;;  %p507_p13 = por %p506_p10, %p505_p4 }
  0x1d   : > { %p509_p1 = por %p508_p12, %p507_p13 }
  0x1f   : > { %p510_p2 = pnand %p509_p1, %p503_p7 }
  0x21   : > { %513 = shalt.err (!%p510_p2)
}
  0x22   : > { %s514_s20 = scalar_lea.vmem %s702_s4, 128  ;;  %s613_s25 = smov [#allocation2]  }
  0x23   : > { %p515_p3 = scmp.ne.s32.totalorder %s702_s4, %s514_s20  ;;  %s519_s26 = sshll.u32 %s613_s25, 4  ;;  %s520_s26 = int_to_ptr.vmem [resolvable:$false] %s519_s26 }
  0x24   : > { %s521_s27 = scalar_lea.vmem %s520_s26, 256  ;;  %p522_p9 = scmp.lt.s32.totalorder %s702_s4, %s520_s26 }
  0x25   : > { %p517_p6 = pnand %p515_p3, %p501_p5  ;;  %p523_p4 = scmp.lt.s32.totalorder %s521_s27, %s514_s20 }
  0x27   : > { %p518_p11 = pneg %p517_p6  ;;  %p524_p10 = por %p523_p4, %p522_p9 }
  0x29   : > { %p525_p12 = pnand %p524_p10, %p518_p11 }
  0x2b   : > { %528 = shalt.err (!%p525_p12)
}
  0x2c   : > { %434 = dma.hbm_to_vmem [thread:$0]  (!%p706_p0), %s700_s30, 128, %s702_s4, %s129_s6  }
  0x2d   : > { %p816_p1 = scmp.lt.s32.totalorder %s611_s14, 3  ;;  %p817_p2 = scmp.ge.s32.totalorder %s611_s14, 1 }
  0x2f   : > { %p148_p5 = pnand %p817_p2, %p816_p1 }
  0x30   : > { %s742_s28 = sand.u32 (!%p148_p5), 1, %s595_s10  }
  0x31   : > { %151 = sbr.rel (%p148_p5) target bundleno = 291 (0x123), region = 28  ;;  %s415_s29 = sshll.u32 (!%p148_p5), %s742_s28, 3 }
  0x32   : > { %s154_s3 = scalar_lea.sflag (!%p148_p5), [#allocation3], %s742_s28  ;;  %s157_s7 = scalar_lea.vmem (!%p148_p5), [#allocation2], %s415_s29 }
  0x38   : > { %582 = dma.done.wait (%p678_p8), %s154_s3, 128  }
  0x39   : > { %584 = vsyncadd (%p678_p8), %s154_s3, 4294967168  ;;  %v614_v0 = vmov 0.0   ;;  %v180_v1 = vld [vmem:[%s157_s7] sm:$0xff]  ;;  %vm185_vm0 = vcmask 1043456   ;;  %vm223_vm1 = vcmask 31744   ;;  %s416_s21 = sshll.u32 %s742_s28, 4 }
  0x3a   : > { %295 = vmatprep.mubr.f32.mxu0 %v614_v0  ;;  %v181_v2 = vmul.f32 %v180_v1, %v180_v1  ;;  %v222_v3 = vcombine.high %v180_v1, %v180_v1  ;;  %v220_v4 = vld [vmem:[%s808_s1] sm:$0xff]  ;;  %s426_s5 = sshll.u32 %s603_s12, 8  ;;  %s177_s6 = scalar_lea.vmem [#allocation5], %s416_s21 }
  0x3b   : > { %s323_s8 = sshll.u32 %s177_s6, 4  ;;  %s758_s18 = scalar_lea.hbm %s809_s2, %s426_s5  ;;  %s760_s8 = int_to_ptr.vmem [resolvable:$true] %s323_s8 }
  0x3c   : > { %v183_v5 = vcombine.high %v181_v2, %v181_v2  ;;  %v186_v6 = vsel %vm185_vm0, %v181_v2, 0.0  ;;  %417 = vmatprep.subr.msk.mxu0 %vm185_vm0, %v222_v3  ;;  %s307_s19 = scalar_lea.sflag [#allocation4], %s742_s28  ;;  %s529_s12 = scalar_lea.vmem %s760_s8, 256 }
  0x3d   : > { %418 = vmatpush1.msk.msra.mxu0 %vm185_vm0, %v180_v1  ;;  %v187_v8 = vrot.slane %v186_v6, 4  ;;  %p530_p8 = scmp.ne.s32.totalorder %s760_s8, %s529_s12  ;;  %p818_p9 = scmp.ne.s32.totalorder %s813_s22, 0 }
  0x3e   : > { %v193_v7 = vsel %vm185_vm0, %v183_v5, 0.0  ;;  %419 = vmatmul.mubr.msk.f32.vlgmr.msra.gmra.mrb[0].mxu0 %vm223_vm1, %v220_v4  ;;  %s615_s20 = smov [#allocation5]  }
  0x3f   : > { %v194_v9 = vrot.slane %v193_v7, 4  ;;  %v188_v10 = vadd.f32 %v187_v8, %v186_v6  ;;  %p531_p11 = pnand %p530_p8, %p818_p9  ;;  %s533_s25 = sshll.u32 %s615_s20, 4  ;;  %s534_s25 = int_to_ptr.vmem [resolvable:$false] %s533_s25 }
  0x40   : > { %s535_s26 = scalar_lea.vmem %s534_s25, 512  ;;  %p536_p7 = scmp.lt.s32.totalorder %s760_s8, %s534_s25 }
  0x41   : > { %v195_v11 = vadd.f32 %v194_v9, %v193_v7  ;;  %v189_v12 = vrot.slane %v188_v10, 2  ;;  %p532_p0 = pneg %p531_p11  ;;  %p537_p13 = scmp.lt.s32.totalorder %s535_s26, %s529_s12 }
  0x43   : > { %v196_v13 = vrot.slane %v195_v11, 2  ;;  %v190_v14 = vadd.f32 %v189_v12, %v188_v10  ;;  %p538_p3 = por %p537_p13, %p536_p7 }
  0x45   : > { %v197_v15 = vadd.f32 %v196_v13, %v195_v11  ;;  %v191_v16 = vrot.slane %v190_v14, 1  ;;  %p539_p6 = pnand %p538_p3, %p532_p0 }
  0x47   : > { %v198_v17 = vrot.slane %v197_v15, 1  ;;  %v192_v18 = vadd.f32 %v191_v16, %v190_v14 }
  0x49   : > { %v199_v19 = vadd.f32 %v198_v17, %v197_v15  ;;  %491 = vrsqrt.f32 %v192_v18  ;;  %vm202_vm2 = vcmp.eq.f32.partialorder %v192_v18, inf  ;;  %v205_v24 = vand.u32 2147483648, %v192_v18 }
  0x4a   : > { %vm204_vm4 = vcmp.eq.f32.partialorder %v192_v18, 0.0 }
  0x4b   : > { %493 = vrsqrt.f32 %v199_v19  ;;  %vm209_vm3 = vcmp.eq.f32.partialorder %v199_v19, inf  ;;  %v212_v26 = vand.u32 2147483648, %v199_v19  ;;  %vm211_vm5 = vcmp.eq.f32.partialorder %v199_v19, 0.0 }
  0x53   : > { %v492_v20 = vpop.eup %491 }
  0x54   : > { %v201_v22 = vmul.f32 %v492_v20, %v192_v18 }
  0x55   : > { %v494_v21 = vpop.eup %493 }
  0x56   : > { %v208_v23 = vmul.f32 %v494_v21, %v199_v19  ;;  %v203_v25 = vsel %vm202_vm2, %v192_v18, %v201_v22 }
  0x57   : > { %v206_v28 = vsel %vm204_vm4, %v205_v24, %v203_v25 }
  0x58   : > { %v210_v27 = vsel %vm209_vm3, %v199_v19, %v208_v23  ;;  %v214_v30 = vmax.f32 %v206_v28, 1e-12 }
  0x59   : > { %v213_v29 = vsel %vm211_vm5, %v212_v26, %v210_v27 }
  0x5a   : > { %v215_v31 = vmax.f32 %v213_v29, 1e-12  ;;  %495 = vrcp.f32 %v214_v30 }
  0x5c   : > { %497 = vrcp.f32 %v215_v31 }
  0x64   : > { %v496_v32 = vpop.eup %495 }
  0x65   : > { %v218_v34 = vmul.f32 10.0, %v496_v32 }
  0x66   : > { %v498_v33 = vpop.eup %497 }
  0x67   : > { %v219_v35 = vmul.f32 10.0, %v498_v33 }
 0x111   : > { %v297_v36 = vpop.f32.mrb[0].mxu0 }
 0x112   : > { %v302_v37 = vmul.f32 %v297_v36, %v218_v34  ;;  %v299_v38 = vpop.f32.mrb[1].mxu0 }
 0x113   : > { %v303_v39 = vmul.f32 %v299_v38, %v219_v35 }
 0x114   : > { %304 = vst [vmem:[%s177_s6] sm:$0xff] %v302_v37 }
 0x115   : > { %305 = vst [vmem:[%s177_s6 + $0x8] sm:$0xff] %v303_v39 }
 0x116   : > { %542 = shalt.err (!%p539_p6)
}
 0x117   : > { %s543_s27 = scalar_lea.hbm %s758_s18, 256  ;;  %s547_s3 = scalar_lea.hbm %s809_s2, 512 }
 0x118   : > { %p544_p4 = scmp.ne.s32.totalorder %s758_s18, %s543_s27  ;;  %p548_p1 = scmp.lt.u32.totalorder %s758_s18, %s809_s2 }
 0x119   : > { %p549_p2 = scmp.lt.u32.totalorder %s547_s3, %s543_s27  ;;  %p551_p8 = scmp.lt.u32.totalorder %s543_s27, %s758_s18 }
 0x11a   : > { %p545_p10 = pnand %p544_p4, %p818_p9 }
 0x11b   : > { %p550_p5 = por %p549_p2, %p548_p1 }
 0x11c   : > { %p546_p12 = pneg %p545_p10 }
 0x11d   : > { %p552_p11 = por %p551_p8, %p550_p5 }
 0x11f   : > { %p553_p0 = pnand %p552_p11, %p546_p12 }
 0x121   : > { %556 = shalt.err (!%p553_p0)
}
 0x122   : > { %429 = dma.vmem_to_hbm [thread:$0]  (%p818_p9), %s760_s8, 256, %s758_s18, %s307_s19  }
 0x123 PF: > { %s335_s4 = sand.u32 1, %s591_s9   ;;  %p819_p7 = scmp.ne.s32.totalorder %s814_s24, 0 }
 0x124   : > { %p820_p13 = scmp.ge.s32.totalorder %s611_s14, 2  ;;  %s336_s21 = scalar_lea.sflag [#allocation4], %s335_s4 }
 0x126   : > { %p436_p3 = pnand %p820_p13, %p819_p7 }
 0x128   : > { %586 = dma.done.wait (!%p436_p3), %s336_s21, 256  }
 0x129   : > { %588 = vsyncadd (!%p436_p3), %s336_s21, 4294967040  ;;  %s18_s14 = sadd.s32 1, %s611_s14   ;;  %s821_s9 = smov %s595_s10 }
 0x12a   : > { %p15_p6 = scmp.ge.s32.totalorder %s18_s14, 4   ;;  %s822_s10 = smov %s599_s11 }
 0x12b   : > { %s823_s11 = smov %s687_s23  ;;  %s824_s12 = smov %s607_s13 }
 0x12c   : > { %s825_s13 = smov %s827_s17  ;;  %17 = sbr.rel (!%p15_p6) target bundleno = 6 (0x6), region = 73 }
 0x133   :  { %341 = vsyncpa [#allocation3], 1 }
 0x134   :  { %343 = vsyncpa [#allocation3 + $0x1], 1 }
 0x135   :  { %344 = vsyncpa [#allocation4], 1 }
 0x136   :  { %346 = vsyncpa [#allocation4 + $0x1], 1 }

</bundles_post_ra>
